<compile_context>
chip_gen: v6e
topology: v6e:2x2x1
jax: 0.10.0
libtpu: 0.0.40
codegen_flags: <defaults>
</compile_context>

<pallas_src>
import jax
import jax.numpy as jnp
from jax import lax
from jax.experimental import pallas as pl
from jax.experimental.pallas import tpu as pltpu


def _mlp_kernel(x_ref,
                w1_ref, b1_ref,
                w2_ref, b2_ref,
                w3_ref, b3_ref,
                w4t_ref, b4_ref,
                o_ref):
    # Layer 1: Linear(input_dim, 256) with BatchNorm folded into W/b, + ReLU (+ Dropout=id).
    h = jnp.dot(x_ref[...], w1_ref[...], preferred_element_type=jnp.float32)
    h = jnp.maximum(h + b1_ref[...], 0.0)

    # Layer 2: Linear(256, 128) with folded BN + ReLU (+ Dropout=id).
    h = jnp.dot(h.astype(jnp.bfloat16), w2_ref[...], preferred_element_type=jnp.float32)
    h = jnp.maximum(h + b2_ref[...], 0.0)

    # Layer 3: Linear(128, 64) + ReLU.
    h = jnp.dot(h.astype(jnp.bfloat16), w3_ref[...], preferred_element_type=jnp.float32)
    h = jnp.maximum(h + b3_ref[...], 0.0)

    # Layer 4: Linear(64, 1) computed as (1, 64) @ (64, TB) by contracting the shared
    # feature axis of w4^T (1, 64) and h (TB, 64).  Batch becomes the lane dimension,
    # so the store is a single lane-dense (1, TB) f32 row (no 128-lane padding).
    out_row = lax.dot_general(
        w4t_ref[...], h,
        dimension_numbers=(((1,), (1,)), ((), ())),
        preferred_element_type=jnp.float32)
    o_ref[...] = (out_row + b4_ref[...]).astype(o_ref.dtype)


def _choose_tile(batch):
    """Batch tile size (lane granule 128, batch lives in the lane dim of the output).
    Up to 2048 rows to amortize per-step grid overhead (footprint is tiny: weights
    ~110 KiB resident, x tile 128 KiB, peak (TB, 256) f32 activation 2 MiB), capped at
    roundup(ceil(B/2), 128) so moderate batches still produce >= 2 grid steps for
    v7x's two TensorCores."""
    lane = 128
    tb_max = 2048
    if batch <= lane:
        return lane
    half = (((batch + 1) // 2) + lane - 1) // lane * lane
    return min(tb_max, max(lane, half))


def mlp_forward(x, prepped, *, tile_b=None):
    """Run the fused MLP Pallas kernel. x: (B, input_dim) float32. Returns (B, 1) f32."""
    B, input_dim = x.shape
    tb = tile_b if tile_b is not None else _choose_tile(B)
    b_pad = pl.cdiv(B, tb) * tb

    xb = x.astype(jnp.bfloat16)
    if b_pad != B:
        # Padded rows are zeros -> they compute ReLU(bias) junk that lands in lanes >= B
        # of the output row and is sliced away below.
        xb = jnp.pad(xb, ((0, b_pad - B), (0, 0)))

    args = (
        xb,
        prepped["w1"], prepped["b1"],
        prepped["w2"], prepped["b2"],
        prepped["w3"], prepped["b3"],
        prepped["w4t"], prepped["b4"],
    )

    # x is tiled along the batch axis; every weight/bias is a full-array block with a
    # constant index_map so it is DMA'd once and stays VMEM-resident across grid steps.
    in_specs = [pl.BlockSpec((tb, input_dim), lambda i: (i, 0))]
    in_specs += [pl.BlockSpec(a.shape, lambda i: (0, 0)) for a in args[1:]]

    flops = 2 * b_pad * (input_dim * 256 + 256 * 128 + 128 * 64 + 64 * 1)
    param_bytes = sum(int(a.size) * a.dtype.itemsize for a in args[1:])
    bytes_accessed = int(xb.size) * xb.dtype.itemsize + b_pad * 4 + param_bytes

    out = pl.pallas_call(
        _mlp_kernel,
        out_shape=jax.ShapeDtypeStruct((1, b_pad), jnp.float32),
        grid=(b_pad // tb,),
        in_specs=in_specs,
        out_specs=pl.BlockSpec((1, tb), lambda i: (0, i)),
        compiler_params=pltpu.CompilerParams(
            dimension_semantics=("parallel",),
        ),
        cost_estimate=pl.CostEstimate(
            flops=flops, transcendentals=0, bytes_accessed=bytes_accessed),
    )(*args)
    return out[0, :B].reshape(B, 1)


def init_params(key, input_dim):
    """Deterministic init mirroring nn.Linear default (uniform +/- 1/sqrt(fan_in)) and
    nn.BatchNorm1d default (gamma=1, beta=0, running_mean=0, running_var=1)."""
    eps = 1e-5
    dims = [(input_dim, 256), (256, 128), (128, 64), (64, 1)]
    keys = jax.random.split(key, 2 * len(dims))
    params = {}
    for i, (fan_in, fan_out) in enumerate(dims):
        bound = 1.0 / jnp.sqrt(jnp.float32(fan_in))
        # Stored as (in, out): PyTorch's W (out, in) transposed, so the kernel does x @ W.
        params[f"w{i + 1}"] = jax.random.uniform(
            keys[2 * i], (fan_in, fan_out), minval=-bound, maxval=bound, dtype=jnp.float32)
        params[f"b{i + 1}"] = jax.random.uniform(
            keys[2 * i + 1], (1, fan_out), minval=-bound, maxval=bound, dtype=jnp.float32)

    # BatchNorm1d eval-mode scale/shift from default-initialized parameters/stats.
    for name, feat in (("bn1", 256), ("bn2", 128)):
        gamma = jnp.ones((1, feat), jnp.float32)
        beta = jnp.zeros((1, feat), jnp.float32)
        running_mean = jnp.zeros((1, feat), jnp.float32)
        running_var = jnp.ones((1, feat), jnp.float32)
        scale = gamma / jnp.sqrt(running_var + eps)
        params[f"{name}_scale"] = scale
        params[f"{name}_shift"] = beta - running_mean * scale
    return params


def prepare_params(params):
    """Fold eval-mode BatchNorm into layer-1/2 weights+biases, transpose the final layer
    to (1, 64) (batch-in-lanes output), and cast layer-1..3 weights to bf16 (f32 biases,
    f32 MXU accumulation).  Layer 4 stays f32: it is tiny and keeps the store path f32."""
    w1 = params["w1"] * params["bn1_scale"]
    b1 = params["b1"] * params["bn1_scale"] + params["bn1_shift"]
    w2 = params["w2"] * params["bn2_scale"]
    b2 = params["b2"] * params["bn2_scale"] + params["bn2_shift"]
    w3, b3 = params["w3"], params["b3"]
    w4t = params["w4"].T            # (1, 64) f32
    b4 = params["b4"]               # (1, 1) f32
    bf16 = jnp.bfloat16
    return {
        "w1": w1.astype(bf16), "b1": b1,
        "w2": w2.astype(bf16), "b2": b2,
        "w3": w3.astype(bf16), "b3": b3,
        "w4t": w4t, "b4": b4,
    }


def mlp_reference(x, prepped):
    """Pure-JAX reference mirroring the kernel math (bf16 MXU operands for layers 1-3,
    f32 accumulation, f32 layer 4)."""
    f32 = jnp.float32
    h = jnp.dot(x.astype(jnp.bfloat16), prepped["w1"], preferred_element_type=f32) + prepped["b1"]
    h = jnp.maximum(h, 0.0)
    h = jnp.dot(h.astype(jnp.bfloat16), prepped["w2"], preferred_element_type=f32) + prepped["b2"]
    h = jnp.maximum(h, 0.0)
    h = jnp.dot(h.astype(jnp.bfloat16), prepped["w3"], preferred_element_type=f32) + prepped["b3"]
    h = jnp.maximum(h, 0.0)
    out = jnp.dot(h, prepped["w4t"].T, preferred_element_type=f32) + prepped["b4"]
    return out


if __name__ == "__main__":
    key = jax.random.PRNGKey(0)
    k_param, k_x = jax.random.split(key)

    batch, input_dim = 8, 32
    raw_params = init_params(k_param, input_dim)
    prepped = prepare_params(raw_params)
    x = jax.random.normal(k_x, (batch, input_dim), dtype=jnp.float32)

    out = jax.block_until_ready(mlp_forward(x, prepped))
    ref = mlp_reference(x, prepped)

    assert out.shape == (batch, 1)
    assert jnp.allclose(out, ref, atol=1e-2, rtol=1e-2)

    print("KERNEL_OK")
</pallas_src>

<mosaic_0001>
module attributes {stable_mosaic.version = 11 : i64} {
  func.func @_mlp_kernel(%arg0: i32, %arg1: memref<128x32xbf16, #tpu.memory_space<vmem>>, %arg2: memref<32x256xbf16, #tpu.memory_space<vmem>>, %arg3: memref<1x256xf32, #tpu.memory_space<vmem>>, %arg4: memref<256x128xbf16, #tpu.memory_space<vmem>>, %arg5: memref<1x128xf32, #tpu.memory_space<vmem>>, %arg6: memref<128x64xbf16, #tpu.memory_space<vmem>>, %arg7: memref<1x64xf32, #tpu.memory_space<vmem>>, %arg8: memref<1x64xf32, #tpu.memory_space<vmem>>, %arg9: memref<1x1xf32, #tpu.memory_space<vmem>>, %arg10: memref<1x128xf32, #tpu.memory_space<vmem>>) attributes {dimension_semantics = [#tpu.dimension_semantics<parallel>], iteration_bounds = array<i64: 1>, scalar_prefetch = 0 : i64, scratch_operands = 0 : i64, tpu.core_type = #tpu.core_type<tc>, window_params = [{transform_indices = @transform_0, window_bounds = array<i64: 128, 32>}, {pipeline_mode = #tpu.pipeline_mode<synchronous>, transform_indices = @transform_1, window_bounds = array<i64: 32, 256>}, {pipeline_mode = #tpu.pipeline_mode<synchronous>, transform_indices = @transform_2, window_bounds = array<i64: 1, 256>}, {pipeline_mode = #tpu.pipeline_mode<synchronous>, transform_indices = @transform_3, window_bounds = array<i64: 256, 128>}, {pipeline_mode = #tpu.pipeline_mode<synchronous>, transform_indices = @transform_4, window_bounds = array<i64: 1, 128>}, {pipeline_mode = #tpu.pipeline_mode<synchronous>, transform_indices = @transform_5, window_bounds = array<i64: 128, 64>}, {pipeline_mode = #tpu.pipeline_mode<synchronous>, transform_indices = @transform_6, window_bounds = array<i64: 1, 64>}, {pipeline_mode = #tpu.pipeline_mode<synchronous>, transform_indices = @transform_7, window_bounds = array<i64: 1, 64>}, {pipeline_mode = #tpu.pipeline_mode<synchronous>, transform_indices = @transform_8, window_bounds = array<i64: 1, 1>}, {transform_indices = @transform_9, window_bounds = array<i64: 1, 128>}]} {
    %c0 = arith.constant 0 : index
    %c0_0 = arith.constant 0 : index
    %0 = vector.load %arg1[%c0, %c0_0] : memref<128x32xbf16, #tpu.memory_space<vmem>>, vector<128x32xbf16>
    %c0_1 = arith.constant 0 : index
    %c0_2 = arith.constant 0 : index
    %1 = vector.load %arg2[%c0_1, %c0_2] : memref<32x256xbf16, #tpu.memory_space<vmem>>, vector<32x256xbf16>
    %cst = arith.constant dense<0.000000e+00> : vector<128x256xf32>
    %2 = tpu.matmul %0, %1, %cst {dimension_numbers = #tpu.dot_dimension_numbers<[1], [0], [0], [1], [0, 0, 1, 1], [], []>} : vector<128x32xbf16>, vector<32x256xbf16>, vector<128x256xf32> -> vector<128x256xf32>
    %c0_3 = arith.constant 0 : index
    %c0_4 = arith.constant 0 : index
    %3 = vector.load %arg3[%c0_3, %c0_4] : memref<1x256xf32, #tpu.memory_space<vmem>>, vector<1x256xf32>
    %4 = vector.broadcast %3 : vector<1x256xf32> to vector<128x256xf32>
    %5 = arith.addf %2, %4 : vector<128x256xf32>
    %cst_5 = arith.constant 0.000000e+00 : f32
    %6 = vector.broadcast %cst_5 : f32 to vector<128x256xf32>
    %7 = arith.maximumf %5, %6 : vector<128x256xf32>
    %8 = arith.truncf %7 : vector<128x256xf32> to vector<128x256xbf16>
    %c0_6 = arith.constant 0 : index
    %c0_7 = arith.constant 0 : index
    %9 = vector.load %arg4[%c0_6, %c0_7] : memref<256x128xbf16, #tpu.memory_space<vmem>>, vector<256x128xbf16>
    %cst_8 = arith.constant dense<0.000000e+00> : vector<128x128xf32>
    %10 = tpu.matmul %8, %9, %cst_8 {dimension_numbers = #tpu.dot_dimension_numbers<[1], [0], [0], [1], [0, 0, 1, 1], [], []>} : vector<128x256xbf16>, vector<256x128xbf16>, vector<128x128xf32> -> vector<128x128xf32>
    %c0_9 = arith.constant 0 : index
    %c0_10 = arith.constant 0 : index
    %11 = vector.load %arg5[%c0_9, %c0_10] : memref<1x128xf32, #tpu.memory_space<vmem>>, vector<1x128xf32>
    %12 = vector.broadcast %11 : vector<1x128xf32> to vector<128x128xf32>
    %13 = arith.addf %10, %12 : vector<128x128xf32>
    %cst_11 = arith.constant 0.000000e+00 : f32
    %14 = vector.broadcast %cst_11 : f32 to vector<128x128xf32>
    %15 = arith.maximumf %13, %14 : vector<128x128xf32>
    %16 = arith.truncf %15 : vector<128x128xf32> to vector<128x128xbf16>
    %c0_12 = arith.constant 0 : index
    %c0_13 = arith.constant 0 : index
    %17 = vector.load %arg6[%c0_12, %c0_13] : memref<128x64xbf16, #tpu.memory_space<vmem>>, vector<128x64xbf16>
    %cst_14 = arith.constant dense<0.000000e+00> : vector<128x64xf32>
    %18 = tpu.matmul %16, %17, %cst_14 {dimension_numbers = #tpu.dot_dimension_numbers<[1], [0], [0], [1], [0, 0, 1, 1], [], []>} : vector<128x128xbf16>, vector<128x64xbf16>, vector<128x64xf32> -> vector<128x64xf32>
    %c0_15 = arith.constant 0 : index
    %c0_16 = arith.constant 0 : index
    %19 = vector.load %arg7[%c0_15, %c0_16] : memref<1x64xf32, #tpu.memory_space<vmem>>, vector<1x64xf32>
    %20 = vector.broadcast %19 : vector<1x64xf32> to vector<128x64xf32>
    %21 = arith.addf %18, %20 : vector<128x64xf32>
    %cst_17 = arith.constant 0.000000e+00 : f32
    %22 = vector.broadcast %cst_17 : f32 to vector<128x64xf32>
    %23 = arith.maximumf %21, %22 : vector<128x64xf32>
    %c0_18 = arith.constant 0 : index
    %c0_19 = arith.constant 0 : index
    %24 = vector.load %arg8[%c0_18, %c0_19] : memref<1x64xf32, #tpu.memory_space<vmem>>, vector<1x64xf32>
    %cst_20 = arith.constant dense<0.000000e+00> : vector<1x128xf32>
    %25 = tpu.matmul %24, %23, %cst_20 {dimension_numbers = #tpu.dot_dimension_numbers<[1], [1], [0], [0], [0, 0, 1, 0], [], []>} : vector<1x64xf32>, vector<128x64xf32>, vector<1x128xf32> -> vector<1x128xf32>
    %c0_21 = arith.constant 0 : index
    %c0_22 = arith.constant 0 : index
    %26 = vector.load %arg9[%c0_21, %c0_22] : memref<1x1xf32, #tpu.memory_space<vmem>>, vector<1x1xf32>
    %27 = vector.broadcast %26 : vector<1x1xf32> to vector<1x128xf32>
    %28 = arith.addf %25, %27 : vector<1x128xf32>
    %c0_23 = arith.constant 0 : index
    %c0_24 = arith.constant 0 : index
    %29 = vector.load %arg10[%c0_23, %c0_24] : memref<1x128xf32, #tpu.memory_space<vmem>>, vector<1x128xf32>
    tpu.vector_store %arg10[%c0_23, %c0_24], %28 {strides = array<i32>} : memref<1x128xf32, #tpu.memory_space<vmem>>, vector<1x128xf32>,
    return
  }
  func.func @transform_0(%arg0: i32) -> (i32, i32) {
    %c0_i32 = arith.constant 0 : i32
    %c0_i32_0 = arith.constant 0 : i32
    return %arg0, %c0_i32 : i32, i32
  }
  func.func @transform_1(%arg0: i32) -> (i32, i32) {
    %c0_i32 = arith.constant 0 : i32
    %c0_i32_0 = arith.constant 0 : i32
    %c0_i32_1 = arith.constant 0 : i32
    return %c0_i32, %c0_i32_0 : i32, i32
  }
  func.func @transform_2(%arg0: i32) -> (i32, i32) {
    %c0_i32 = arith.constant 0 : i32
    %c0_i32_0 = arith.constant 0 : i32
    %c0_i32_1 = arith.constant 0 : i32
    return %c0_i32, %c0_i32_0 : i32, i32
  }
  func.func @transform_3(%arg0: i32) -> (i32, i32) {
    %c0_i32 = arith.constant 0 : i32
    %c0_i32_0 = arith.constant 0 : i32
    %c0_i32_1 = arith.constant 0 : i32
    return %c0_i32, %c0_i32_0 : i32, i32
  }
  func.func @transform_4(%arg0: i32) -> (i32, i32) {
    %c0_i32 = arith.constant 0 : i32
    %c0_i32_0 = arith.constant 0 : i32
    %c0_i32_1 = arith.constant 0 : i32
    return %c0_i32, %c0_i32_0 : i32, i32
  }
  func.func @transform_5(%arg0: i32) -> (i32, i32) {
    %c0_i32 = arith.constant 0 : i32
    %c0_i32_0 = arith.constant 0 : i32
    %c0_i32_1 = arith.constant 0 : i32
    return %c0_i32, %c0_i32_0 : i32, i32
  }
  func.func @transform_6(%arg0: i32) -> (i32, i32) {
    %c0_i32 = arith.constant 0 : i32
    %c0_i32_0 = arith.constant 0 : i32
    %c0_i32_1 = arith.constant 0 : i32
    return %c0_i32, %c0_i32_0 : i32, i32
  }
  func.func @transform_7(%arg0: i32) -> (i32, i32) {
    %c0_i32 = arith.constant 0 : i32
    %c0_i32_0 = arith.constant 0 : i32
    %c0_i32_1 = arith.constant 0 : i32
    return %c0_i32, %c0_i32_0 : i32, i32
  }
  func.func @transform_8(%arg0: i32) -> (i32, i32) {
    %c0_i32 = arith.constant 0 : i32
    %c0_i32_0 = arith.constant 0 : i32
    %c0_i32_1 = arith.constant 0 : i32
    return %c0_i32, %c0_i32_0 : i32, i32
  }
  func.func @transform_9(%arg0: i32) -> (i32, i32) {
    %c0_i32 = arith.constant 0 : i32
    %c0_i32_0 = arith.constant 0 : i32
    return %c0_i32, %arg0 : i32, i32
  }
}

</mosaic_0001>

<bundles_post_ra>
// kernel: tpu_custom_call.1
= control target key start
LH: loop header
LB: loop body
LE: loop exit
PB: predicated region body
PF: predicated region fallthrough
CT: control target
= control target key end

     0   :  { %s1487_s0 = inlined_call_operand.vmem [shape: bf16[128,32], index: 0, kind: input, shape index: {}]   ;;  %s1488_s1 = inlined_call_operand.vmem [shape: bf16[32,256], index: 1, kind: input, shape index: {}]   ;;  %s1489_s2 = inlined_call_operand.vmem [shape: f32[1,256], index: 2, kind: input, shape index: {}]   ;;  %s1490_s3 = inlined_call_operand.vmem [shape: bf16[256,128], index: 3, kind: input, shape index: {}]   ;;  %s1491_s4 = inlined_call_operand.vmem [shape: f32[1,128], index: 4, kind: input, shape index: {}]   ;;  %s1492_s5 = inlined_call_operand.vmem [shape: bf16[128,64], index: 5, kind: input, shape index: {}]   ;;  %s1493_s6 = inlined_call_operand.vmem [shape: f32[1,64], index: 6, kind: input, shape index: {}]   ;;  %s1494_s7 = inlined_call_operand.vmem [shape: f32[1,64], index: 7, kind: input, shape index: {}]   ;;  %s1495_s8 = inlined_call_operand.<no memory space> [shape: f32[1,1], index: 8, kind: input, shape index: {}]   ;;  %s1496_s9 = inlined_call_operand.hbm [shape: f32[1,128], index: 9, kind: output, shape index: {}]  }
   0x1   :  { %v14_v0 = vstv %s1495_s8 }
   0x2   :  { %15 = vst [vmem:[#allocation2] sm:$0x1] %v14_v0 }
   0x3   :  { %v1134_v1 = vld [vmem:[%s1488_s1 + $0x14] ss:$8 sps:$4 sm:$0xff]   ;;  %v1136_v2 = vld [vmem:[%s1488_s1 + $0x10] ss:$8 sps:$4 sm:$0xff]   ;;  %v1194_v3 = vmov 0   ;;  %v1140_v6 = vld [vmem:[%s1487_s0] sm:$0xff]  }
   0x4   :  { %185 = vmatprep.mubr.bf16.mxu0 %v1194_v3  ;;  %1133 = vset.pattern.permute.xlu0 %v1194_v3  ;;  %v1137_v4 = vld [vmem:[%s1488_s1 + $0x4] ss:$8 sps:$4 sm:$0xff]   ;;  %v1139_v5 = vld [vmem:[%s1488_s1] ss:$8 sps:$4 sm:$0xff]   ;;  %vm128_vm0 = vcmask 261120   ;;  %v1148_v7 = vld [vmem:[%s1490_s3 + $0x78] sm:$0xff]  }
   0x5   :  { %165 = vmatprep.subr.bf16.mxu0 %v1134_v1  ;;  %v1141_v8 = vld [vmem:[%s1487_s0 + $0x8] sm:$0xff]   ;;  %v1149_v9 = vld [vmem:[%s1490_s3 + $0x38] sm:$0xff]   ;;  %965 = vmatprep.subr.bf16.mxu1 %v1148_v7  ;;  %v1150_v10 = vld [vmem:[%s1490_s3 + $0x70] sm:$0xff]  }
   0x6   :  { %166 = vmatpush1.bf16.msra.mxu0 %v1136_v2  ;;  %966 = vmatpush3.bf16.msra.mxu1 %v1149_v9  ;;  %v1151_v11 = vld [vmem:[%s1490_s3 + $0x30] sm:$0xff]   ;;  %v1152_v12 = vld [vmem:[%s1490_s3 + $0x68] sm:$0xff]   ;;  %v1154_v14 = vld [vmem:[%s1490_s3 + $0x60] sm:$0xff]  }
   0x7   :  { %167 = vmatprep.subr.bf16.mxu0 %v1137_v4  ;;  %967 = vmatprep.subr.bf16.mxu1 %v1150_v10  ;;  %v1153_v13 = vld [vmem:[%s1490_s3 + $0x28] sm:$0xff]   ;;  %v1142_v15 = vld [vmem:[%s1487_s0 + $0x10] sm:$0xff]   ;;  %v1155_v16 = vld [vmem:[%s1490_s3 + $0x20] sm:$0xff]  }
   0x8   :  { %v1156_v17 = vld [vmem:[%s1490_s3 + $0x58] sm:$0xff]  }
   0x9   :  { %v1157_v18 = vld [vmem:[%s1490_s3 + $0x18] sm:$0xff]  }
   0xa   :  { %168 = vmatpush1.bf16.msra.mxu0 %v1139_v5  ;;  %968 = vmatpush3.bf16.msra.mxu1 %v1151_v11  ;;  %v1143_v19 = vld [vmem:[%s1487_s0 + $0x18] sm:$0xff]  }
   0xb   :  { %969 = vmatprep.subr.bf16.mxu1 %v1152_v12 }
   0xd   :  { %914 = vmatmul.mubr.msk.bf16.vlgmr.msra.gmra.mxu0 %vm128_vm0, %v1140_v6 }
   0xe   :  { %195 = vmatprep.mubr.bf16.mxu0 %v1194_v3  ;;  %970 = vmatpush3.bf16.msra.mxu1 %v1153_v13 }
   0xf   :  { %971 = vmatprep.subr.bf16.mxu1 %v1154_v14 }
  0x12   :  { %972 = vmatpush3.bf16.msra.mxu1 %v1155_v16 }
  0x13   :  { %973 = vmatprep.subr.bf16.mxu1 %v1156_v17 }
  0x15   :  { %915 = vmatmul.mubr.msk.bf16.gmra.mxu0 %vm128_vm0, %v1141_v8 }
  0x16   :  { %205 = vmatprep.mubr.bf16.mxu0 %v1194_v3  ;;  %974 = vmatpush3.bf16.msra.mxu1 %v1157_v18 }
  0x1d   :  { %916 = vmatmul.mubr.msk.bf16.gmra.mxu0 %vm128_vm0, %v1142_v15 }
  0x1e   :  { %215 = vmatprep.mubr.bf16.mxu0 %v1194_v3 }
  0x1f   :  { %16 = vsyncpa [#allocation4], 0  ;;  %v1144_v20 = vld [vmem:[%s1487_s0 + $0x20] sm:$0xff]   ;;  %v1145_v21 = vld [vmem:[%s1487_s0 + $0x28] sm:$0xff]   ;;  %v58_v33 = vlaneseq  ;;  %vm1196_vm1 = vmmov 0   ;;  %vm765_vm2 = vcmask 523264  }
  0x20   :  { %v1146_v22 = vld [vmem:[%s1487_s0 + $0x30] sm:$0xff]   ;;  %v1147_v23 = vld [vmem:[%s1487_s0 + $0x38] sm:$0xff]   ;;  %v1160_v26 = vld [vmem:[%s1490_s3 + $0x48] sm:$0xff]   ;;  %s1197_s16 = smov [#allocation3]  }
  0x21   :  { %v1158_v24 = vld [vmem:[%s1490_s3 + $0x50] sm:$0xff]   ;;  %v1161_v27 = vld [vmem:[%s1490_s3 + $0x8] sm:$0xff]   ;;  %v1162_v28 = vld [vmem:[%s1490_s3 + $0x40] sm:$0xff]   ;;  %v1352_v34 = vshrl.u32 %v58_v33, 7  ;;  %s894_s0 = sshll.u32 %s1197_s16, 4  ;;  %s895_s0 = int_to_ptr.vmem [resolvable:$true] %s894_s0 }
  0x22   :  { %v1159_v25 = vld [vmem:[%s1490_s3 + $0x10] sm:$0xff]   ;;  %975 = vmatprep.subr.bf16.mxu1 %v1158_v24  ;;  %v1163_v29 = vld [vmem:[%s1490_s3] sm:$0xff]   ;;  %v1164_v30 = vld [vmem:[%s1492_s5 + $0x38] sm:$0xff]   ;;  %s1172_s17 = scalar_lea.vmem %s895_s0, 16  ;;  %s1176_s8 = scalar_lea.vmem %s895_s0, 32 }
  0x23   :  { %976 = vmatpush3.bf16.msra.mxu1 %v1159_v25  ;;  %v1165_v31 = vld [vmem:[%s1492_s5 + $0x30] sm:$0xff]   ;;  %1062 = vmatprep.subr.bf16.mxu0 %v1164_v30  ;;  %v1166_v32 = vld [vmem:[%s1492_s5 + $0x28] sm:$0xff]   ;;  %v64_v35 = vsub.s32 1, %v1352_v34  ;;  %v60_v36 = vsub.s32 0, %v1352_v34  ;;  %v56_v37 = vld [vmem:[%s1489_s2] sm:$0x3]  ;;  %p1173_p0 = scmp.ne.s32.totalorder %s895_s0, %s1172_s17  ;;  %p1177_p1 = scmp.lt.s32.totalorder %s895_s0, %s895_s0 }
  0x24   :  { %977 = vmatprep.subr.bf16.mxu1 %v1160_v26  ;;  %1063 = vmatpush3.bf16.msra.mxu0 %v1164_v30  ;;  %p1178_p2 = scmp.lt.s32.totalorder %s1176_s8, %s1172_s17 }
  0x25   :  { %917 = vmatmul.mubr.msk.bf16.gmra.mxu0 %vm128_vm0, %v1143_v19  ;;  %1064 = vmatprep.subr.bf16.mxu0 %v1165_v31  ;;  %v1359_v39 = vrot.slane %v56_v37, %v64_v35  ;;  %v1363_v40 = vrot.slane %v56_v37, %v60_v36 }
  0x26   :  { %225 = vmatprep.mubr.bf16.mxu0 %v1194_v3  ;;  %p1179_p3 = por %p1178_p2, %p1177_p1 }
  0x27   :  { %978 = vmatpush3.bf16.msra.mxu1 %v1161_v27 }
  0x28   :  { %979 = vmatprep.subr.bf16.mxu1 %v1162_v28  ;;  %1065 = vmatpush3.bf16.msra.mxu0 %v1165_v31  ;;  %p1180_p4 = pnand %p1179_p3, %p1173_p0 }
  0x29   :  { %1066 = vmatprep.subr.bf16.mxu0 %v1166_v32 }
  0x2b   :  { %980 = vmatpush3.bf16.msra.mxu1 %v1163_v29 }
  0x2c   :  { %1067 = vmatpush3.bf16.msra.mxu0 %v1166_v32 }
  0x2d   :  { %918 = vmatmul.mubr.msk.bf16.gmra.mxu0 %vm128_vm0, %v1144_v20 }
  0x2e   :  { %235 = vmatprep.mubr.bf16.mxu0 %v1194_v3 }
  0x35   :  { %919 = vmatmul.mubr.msk.bf16.gmra.mxu0 %vm128_vm0, %v1145_v21 }
  0x36   :  { %245 = vmatprep.mubr.bf16.mxu0 %v1194_v3 }
  0x3d   :  { %920 = vmatmul.mubr.msk.bf16.gmra.mxu0 %vm128_vm0, %v1146_v22 }
  0x3e   :  { %255 = vmatprep.mubr.bf16.mxu0 %v1194_v3 }
  0x45   :  { %921 = vmatmul.mubr.msk.bf16.gmra.mxu0 %vm128_vm0, %v1147_v23 }
  0xcd   :  { %v187_v38 = vpop.f32.mrf.mxu0 }
  0xce   :  { %v188_v45 = vadd.f32 %v187_v38, %v1363_v40 }
  0xcf   :  { %v189_v41 = vpop.f32.mrf.mxu0 }
  0xd0   :  { %v190_v43 = vadd.f32 %v189_v41, %v1359_v39  ;;  %v266_v52 = vmax.f32 %v188_v45, 0.0 }
  0xd1   :  { %v191_v42 = vpop.f32.mrf.mxu0 }
  0xd2   :  { %v192_v44 = vadd.f32 %v191_v42, %v1363_v40  ;;  %v267_v50 = vmax.f32 %v190_v43, 0.0 }
  0xd3   :  { %v193_v46 = vpop.f32.mrf.mxu0 }
  0xd4   :  { %v194_v47 = vadd.f32 %v193_v46, %v1359_v39  ;;  %v268_v48 = vmax.f32 %v192_v44, 0.0 }
  0xd5   :  { %v197_v49 = vpop.f32.mrf.mxu0 }
  0xd6   :  { %v269_v51 = vmax.f32 %v194_v47, 0.0  ;;  %v298_v55 = vpack.c.bf16 %v268_v48, %v266_v52  ;;  %v198_v59 = vadd.f32 %v197_v49, %v1363_v40 }
  0xd7   :  { %v199_v53 = vpop.f32.mrf.mxu0 }
  0xd8   :  { %v299_v54 = vpack.c.bf16 %v269_v51, %v267_v50  ;;  %v200_v57 = vadd.f32 %v199_v53, %v1359_v39  ;;  %v270_v2 = vmax.f32 %v198_v59, 0.0 }
  0xd9   :  { %v201_v56 = vpop.f32.mrf.mxu0 }
  0xda   :  { %v202_v58 = vadd.f32 %v201_v56, %v1363_v40  ;;  %481 = vmatprep.mubr.bf16.mxu1 %v299_v54  ;;  %v271_v0 = vmax.f32 %v200_v57, 0.0 }
  0xdb   :  { %v203_v60 = vpop.f32.mrf.mxu0  ;;  %482 = vmatmul.mubr.bf16.vlgmr.msra.gmra.mxu1 %v298_v55 }
  0xdc   :  { %v204_v61 = vadd.f32 %v203_v60, %v1359_v39  ;;  %v272_v62 = vmax.f32 %v202_v58, 0.0 }
  0xdd   :  { %v207_v63 = vpop.f32.mrf.mxu0 }
  0xde   :  { %v273_v1 = vmax.f32 %v204_v61, 0.0  ;;  %v300_v5 = vpack.c.bf16 %v272_v62, %v270_v2  ;;  %v208_v9 = vadd.f32 %v207_v63, %v1363_v40 }
  0xdf   :  { %v209_v3 = vpop.f32.mrf.mxu0 }
  0xe0   :  { %v301_v4 = vpack.c.bf16 %v273_v1, %v271_v0  ;;  %v210_v7 = vadd.f32 %v209_v3, %v1359_v39  ;;  %v274_v16 = vmax.f32 %v208_v9, 0.0 }
  0xe1   :  { %v211_v6 = vpop.f32.mrf.mxu0 }
  0xe2   :  { %v212_v8 = vadd.f32 %v211_v6, %v1363_v40  ;;  %489 = vmatprep.mubr.bf16.mxu1 %v301_v4  ;;  %v275_v14 = vmax.f32 %v210_v7, 0.0 }
  0xe3   :  { %v213_v10 = vpop.f32.mrf.mxu0  ;;  %490 = vmatmul.mubr.bf16.gmra.mxu1 %v300_v5 }
  0xe4   :  { %v214_v11 = vadd.f32 %v213_v10, %v1359_v39  ;;  %v276_v12 = vmax.f32 %v212_v8, 0.0 }
  0xe5   :  { %v217_v13 = vpop.f32.mrf.mxu0 }
  0xe6   :  { %v277_v15 = vmax.f32 %v214_v11, 0.0  ;;  %v302_v19 = vpack.c.bf16 %v276_v12, %v274_v16  ;;  %v218_v23 = vadd.f32 %v217_v13, %v1363_v40 }
  0xe7   :  { %v219_v17 = vpop.f32.mrf.mxu0 }
  0xe8   :  { %v303_v18 = vpack.c.bf16 %v277_v15, %v275_v14  ;;  %v220_v21 = vadd.f32 %v219_v17, %v1359_v39  ;;  %v278_v30 = vmax.f32 %v218_v23, 0.0 }
  0xe9   :  { %v221_v20 = vpop.f32.mrf.mxu0 }
  0xea   :  { %v222_v22 = vadd.f32 %v221_v20, %v1363_v40  ;;  %497 = vmatprep.mubr.bf16.mxu1 %v303_v18  ;;  %v279_v28 = vmax.f32 %v220_v21, 0.0 }
  0xeb   :  { %v223_v24 = vpop.f32.mrf.mxu0  ;;  %498 = vmatmul.mubr.bf16.gmra.mxu1 %v302_v19 }
  0xec   :  { %v224_v25 = vadd.f32 %v223_v24, %v1359_v39  ;;  %v280_v26 = vmax.f32 %v222_v22, 0.0 }
  0xed   :  { %v227_v27 = vpop.f32.mrf.mxu0 }
  0xee   :  { %v281_v29 = vmax.f32 %v224_v25, 0.0  ;;  %v304_v33 = vpack.c.bf16 %v280_v26, %v278_v30  ;;  %v228_v41 = vadd.f32 %v227_v27, %v1363_v40  ;;  %v1171_v30 = vld [vmem:[%s1492_s5] sm:$0xff]  }
  0xef   :  { %v229_v31 = vpop.f32.mrf.mxu0 }
  0xf0   :  { %v305_v32 = vpack.c.bf16 %v281_v29, %v279_v28  ;;  %v230_v37 = vadd.f32 %v229_v31, %v1359_v39  ;;  %v282_v48 = vmax.f32 %v228_v41, 0.0  ;;  %v1167_v28 = vld [vmem:[%s1492_s5 + $0x20] sm:$0xff]   ;;  %v1170_v29 = vld [vmem:[%s1492_s5 + $0x8] sm:$0xff]  }
  0xf1   :  { %v231_v35 = vpop.f32.mrf.mxu0  ;;  %1068 = vmatprep.subr.bf16.mxu0 %v1167_v28 }
  0xf2   :  { %v232_v38 = vadd.f32 %v231_v35, %v1363_v40  ;;  %505 = vmatprep.mubr.bf16.mxu1 %v305_v32  ;;  %v283_v46 = vmax.f32 %v230_v37, 0.0  ;;  %1069 = vmatpush3.bf16.msra.mxu0 %v1167_v28  ;;  %v1415_v35 = vld [vmem:[%s1491_s4] ss:$0 sm:$0xff] }
  0xf3   :  { %v233_v42 = vpop.f32.mrf.mxu0  ;;  %506 = vmatmul.mubr.bf16.gmra.mxu1 %v304_v33 }
  0xf4   :  { %v234_v43 = vadd.f32 %v233_v42, %v1359_v39  ;;  %v284_v44 = vmax.f32 %v232_v38, 0.0 }
  0xf5   :  { %v237_v45 = vpop.f32.mrf.mxu0 }
  0xf6   :  { %v285_v47 = vmax.f32 %v234_v43, 0.0  ;;  %v306_v51 = vpack.c.bf16 %v284_v44, %v282_v48  ;;  %v238_v55 = vadd.f32 %v237_v45, %v1363_v40 }
  0xf7   :  { %v239_v49 = vpop.f32.mrf.mxu0 }
  0xf8   :  { %v307_v50 = vpack.c.bf16 %v285_v47, %v283_v46  ;;  %v240_v53 = vadd.f32 %v239_v49, %v1359_v39  ;;  %v286_v62 = vmax.f32 %v238_v55, 0.0 }
  0xf9   :  { %v241_v52 = vpop.f32.mrf.mxu0 }
  0xfa   :  { %v242_v54 = vadd.f32 %v241_v52, %v1363_v40  ;;  %513 = vmatprep.mubr.bf16.mxu1 %v307_v50  ;;  %v287_v60 = vmax.f32 %v240_v53, 0.0 }
  0xfb   :  { %v243_v56 = vpop.f32.mrf.mxu0  ;;  %514 = vmatmul.mubr.bf16.gmra.mxu1 %v306_v51 }
  0xfc   :  { %v244_v57 = vadd.f32 %v243_v56, %v1359_v39  ;;  %v288_v58 = vmax.f32 %v242_v54, 0.0 }
  0xfd   :  { %v247_v59 = vpop.f32.mrf.mxu0 }
  0xfe   :  { %v289_v61 = vmax.f32 %v244_v57, 0.0  ;;  %v308_v1 = vpack.c.bf16 %v288_v58, %v286_v62  ;;  %v248_v5 = vadd.f32 %v247_v59, %v1363_v40 }
  0xff   :  { %v249_v63 = vpop.f32.mrf.mxu0 }
 0x100   :  { %v309_v0 = vpack.c.bf16 %v289_v61, %v287_v60  ;;  %v250_v3 = vadd.f32 %v249_v63, %v1359_v39  ;;  %v290_v12 = vmax.f32 %v248_v5, 0.0 }
 0x101   :  { %v251_v2 = vpop.f32.mrf.mxu0 }
 0x102   :  { %v252_v4 = vadd.f32 %v251_v2, %v1363_v40  ;;  %521 = vmatprep.mubr.bf16.mxu1 %v309_v0  ;;  %v291_v10 = vmax.f32 %v250_v3, 0.0 }
 0x103   :  { %v253_v6 = vpop.f32.mrf.mxu0  ;;  %522 = vmatmul.mubr.bf16.gmra.mxu1 %v308_v1 }
 0x104   :  { %v254_v7 = vadd.f32 %v253_v6, %v1359_v39  ;;  %v292_v8 = vmax.f32 %v252_v4, 0.0 }
 0x105   :  { %v257_v9 = vpop.f32.mrf.mxu0 }
 0x106   :  { %v293_v11 = vmax.f32 %v254_v7, 0.0  ;;  %v310_v15 = vpack.c.bf16 %v292_v8, %v290_v12  ;;  %v258_v19 = vadd.f32 %v257_v9, %v1363_v40 }
 0x107   :  { %v259_v13 = vpop.f32.mrf.mxu0 }
 0x108   :  { %v311_v14 = vpack.c.bf16 %v293_v11, %v291_v10  ;;  %v260_v17 = vadd.f32 %v259_v13, %v1359_v39  ;;  %v294_v25 = vmax.f32 %v258_v19, 0.0 }
 0x109   :  { %v261_v16 = vpop.f32.mrf.mxu0 }
 0x10a   :  { %v262_v18 = vadd.f32 %v261_v16, %v1363_v40  ;;  %529 = vmatprep.mubr.bf16.mxu1 %v311_v14  ;;  %v295_v23 = vmax.f32 %v260_v17, 0.0  ;;  %v1168_v40 = vld [vmem:[%s1492_s5 + $0x18] sm:$0xff]  }
 0x10b   :  { %v263_v20 = vpop.f32.mrf.mxu0  ;;  %530 = vmatmul.mubr.bf16.gmra.mxu1 %v310_v15  ;;  %1070 = vmatprep.subr.bf16.mxu0 %v1168_v40 }
 0x10c   :  { %v264_v21 = vadd.f32 %v263_v20, %v1359_v39  ;;  %v296_v22 = vmax.f32 %v262_v18, 0.0  ;;  %1071 = vmatpush3.bf16.msra.mxu0 %v1168_v40  ;;  %v1169_v39 = vld [vmem:[%s1492_s5 + $0x10] sm:$0xff]  }
 0x10d   :  { %1072 = vmatprep.subr.bf16.mxu0 %v1169_v39 }
 0x10e   :  { %v297_v24 = vmax.f32 %v264_v21, 0.0  ;;  %v312_v27 = vpack.c.bf16 %v296_v22, %v294_v25 }
 0x110   :  { %v313_v26 = vpack.c.bf16 %v297_v24, %v295_v23  ;;  %1073 = vmatpush3.bf16.msra.mxu0 %v1169_v39 }
 0x111   :  { %1074 = vmatprep.subr.bf16.mxu0 %v1170_v29 }
 0x112   :  { %537 = vmatprep.mubr.bf16.mxu1 %v313_v26 }
 0x113   :  { %538 = vmatmul.mubr.bf16.gmra.mxu1 %v312_v27 }
 0x114   :  { %1075 = vmatpush3.bf16.msra.mxu0 %v1170_v29 }
 0x115   :  { %1076 = vmatprep.subr.bf16.mxu0 %v1171_v30 }
 0x118   :  { %1077 = vmatpush3.bf16.msra.mxu0 %v1171_v30 }
 0x19b   :  { %v981_v31 = vpop.f32.mrf.mxu1 }
 0x19d   :  { %v982_v32 = vpop.f32.mrf.mxu1 }
 0x19e   :  { %v983_v33 = vadd.f32 %v982_v32, %v981_v31 }
 0x19f   :  { %v984_v37 = vpop.f32.mrf.mxu1 }
 0x1a0   :  { %v484_v41 = vadd.f32 %v983_v33, %v1415_v35 }
 0x1a1   :  { %v985_v38 = vpop.f32.mrf.mxu1 }
 0x1a2   :  { %v986_v42 = vadd.f32 %v985_v38, %v984_v37  ;;  %v546_v46 = vmax.f32 %v484_v41, 0.0 }
 0x1a3   :  { %v987_v43 = vpop.f32.mrf.mxu1 }
 0x1a4   :  { %v487_v44 = vadd.f32 %v986_v42, %v1415_v35 }
 0x1a5   :  { %v988_v45 = vpop.f32.mrf.mxu1 }
 0x1a6   :  { %v547_v47 = vmax.f32 %v487_v44, 0.0  ;;  %v989_v48 = vadd.f32 %v988_v45, %v987_v43 }
 0x1a7   :  { %v990_v49 = vpop.f32.mrf.mxu1 }
 0x1a8   :  { %v562_v50 = vpack.c.bf16 %v547_v47, %v546_v46  ;;  %v492_v52 = vadd.f32 %v989_v48, %v1415_v35 }
 0x1a9   :  { %v991_v51 = vpop.f32.mrf.mxu1 }
 0x1aa   :  { %v992_v53 = vadd.f32 %v991_v51, %v990_v49  ;;  %1078 = vmatprep.mubr.bf16.mxu0 %v562_v50  ;;  %v548_v57 = vmax.f32 %v492_v52, 0.0 }
 0x1ab   :  { %v993_v54 = vpop.f32.mrf.mxu1 }
 0x1ac   :  { %v495_v55 = vadd.f32 %v992_v53, %v1415_v35 }
 0x1ad   :  { %v994_v56 = vpop.f32.mrf.mxu1 }
 0x1ae   :  { %v549_v58 = vmax.f32 %v495_v55, 0.0  ;;  %v995_v59 = vadd.f32 %v994_v56, %v993_v54 }
 0x1af   :  { %v996_v60 = vpop.f32.mrf.mxu1 }
 0x1b0   :  { %v563_v61 = vpack.c.bf16 %v549_v58, %v548_v57  ;;  %v500_v63 = vadd.f32 %v995_v59, %v1415_v35 }
 0x1b1   :  { %v997_v62 = vpop.f32.mrf.mxu1 }
 0x1b2   :  { %v998_v0 = vadd.f32 %v997_v62, %v996_v60  ;;  %1079 = vmatmul.mubr.bf16.vlgmr.msra.gmra.mxu0 %v563_v61  ;;  %v550_v4 = vmax.f32 %v500_v63, 0.0  ;;  %v1195_v63 = vmov 0.0  }
 0x1b3   :  { %v999_v1 = vpop.f32.mrf.mxu1  ;;  %1094 = vmatprep.subr.mxu1 %v1195_v63  ;;  %1126 = vmatprep.mubr.msk.f32.mxu1 %vm1196_vm1, %v1195_v63 }
 0x1b4   :  { %v503_v2 = vadd.f32 %v998_v0, %v1415_v35  ;;  %v755_v0 = vld [vmem:[#allocation2] sm:$0x1] }
 0x1b5   :  { %v1000_v3 = vpop.f32.mrf.mxu1  ;;  %758 = vperm.xlu0 %1133, %v755_v0  }
 0x1b6   :  { %v551_v5 = vmax.f32 %v503_v2, 0.0  ;;  %v1001_v6 = vadd.f32 %v1000_v3, %v999_v1 }
 0x1b7   :  { %v1002_v7 = vpop.f32.mrf.mxu1 }
 0x1b8   :  { %v564_v8 = vpack.c.bf16 %v551_v5, %v550_v4  ;;  %v508_v10 = vadd.f32 %v1001_v6, %v1415_v35 }
 0x1b9   :  { %v1003_v9 = vpop.f32.mrf.mxu1 }
 0x1ba   :  { %v1004_v11 = vadd.f32 %v1003_v9, %v1002_v7  ;;  %1082 = vmatprep.mubr.bf16.mxu0 %v564_v8  ;;  %v552_v15 = vmax.f32 %v508_v10, 0.0 }
 0x1bb   :  { %v1005_v12 = vpop.f32.mrf.mxu1 }
 0x1bc   :  { %v511_v13 = vadd.f32 %v1004_v11, %v1415_v35 }
 0x1bd   :  { %v1006_v14 = vpop.f32.mrf.mxu1 }
 0x1be   :  { %v553_v16 = vmax.f32 %v511_v13, 0.0  ;;  %v1007_v17 = vadd.f32 %v1006_v14, %v1005_v12  ;;  %v939_v14 = vld [vmem:[%s1493_s6] ss:$0 sm:$0xff] }
 0x1bf   :  { %v1008_v18 = vpop.f32.mrf.mxu1 }
 0x1c0   :  { %v565_v19 = vpack.c.bf16 %v553_v16, %v552_v15  ;;  %v516_v21 = vadd.f32 %v1007_v17, %v1415_v35 }
 0x1c1   :  { %v1009_v20 = vpop.f32.mrf.mxu1 }
 0x1c2   :  { %v1010_v22 = vadd.f32 %v1009_v20, %v1008_v18  ;;  %1083 = vmatmul.mubr.bf16.gmra.mxu0 %v565_v19  ;;  %v554_v26 = vmax.f32 %v516_v21, 0.0 }
 0x1c3   :  { %v1011_v23 = vpop.f32.mrf.mxu1 }
 0x1c4   :  { %v519_v24 = vadd.f32 %v1010_v22, %v1415_v35 }
 0x1c5   :  { %v1012_v25 = vpop.f32.mrf.mxu1 }
 0x1c6   :  { %v555_v27 = vmax.f32 %v519_v24, 0.0  ;;  %v1013_v28 = vadd.f32 %v1012_v25, %v1011_v23 }
 0x1c7   :  { %v1014_v40 = vpop.f32.mrf.mxu1 }
 0x1c8   :  { %v566_v39 = vpack.c.bf16 %v555_v27, %v554_v26  ;;  %v524_v30 = vadd.f32 %v1013_v28, %v1415_v35 }
 0x1c9   :  { %v1015_v29 = vpop.f32.mrf.mxu1 }
 0x1ca   :  { %v1016_v31 = vadd.f32 %v1015_v29, %v1014_v40  ;;  %1086 = vmatprep.mubr.bf16.mxu0 %v566_v39  ;;  %v556_v38 = vmax.f32 %v524_v30, 0.0 }
 0x1cb   :  { %v1017_v32 = vpop.f32.mrf.mxu1 }
 0x1cc   :  { %v527_v33 = vadd.f32 %v1016_v31, %v1415_v35 }
 0x1cd   :  { %v1018_v37 = vpop.f32.mrf.mxu1 }
 0x1ce   :  { %v557_v41 = vmax.f32 %v527_v33, 0.0  ;;  %v1019_v42 = vadd.f32 %v1018_v37, %v1017_v32 }
 0x1cf   :  { %v1020_v43 = vpop.f32.mrf.mxu1 }
 0x1d0   :  { %v567_v44 = vpack.c.bf16 %v557_v41, %v556_v38  ;;  %v532_v46 = vadd.f32 %v1019_v42, %v1415_v35 }
 0x1d1   :  { %v1021_v45 = vpop.f32.mrf.mxu1 }
 0x1d2   :  { %v1022_v47 = vadd.f32 %v1021_v45, %v1020_v43  ;;  %1087 = vmatmul.mubr.bf16.gmra.mxu0 %v567_v44  ;;  %v558_v51 = vmax.f32 %v532_v46, 0.0 }
 0x1d3   :  { %v1023_v48 = vpop.f32.mrf.mxu1 }
 0x1d4   :  { %v535_v49 = vadd.f32 %v1022_v47, %v1415_v35 }
 0x1d5   :  { %v1024_v50 = vpop.f32.mrf.mxu1 }
 0x1d6   :  { %v559_v52 = vmax.f32 %v535_v49, 0.0  ;;  %v1025_v53 = vadd.f32 %v1024_v50, %v1023_v48 }
 0x1d7   :  { %v1026_v54 = vpop.f32.mrf.mxu1 }
 0x1d8   :  { %v568_v55 = vpack.c.bf16 %v559_v52, %v558_v51  ;;  %v540_v57 = vadd.f32 %v1025_v53, %v1415_v35  ;;  %v754_v52 = vld [vmem:[%s1494_s7] sm:$0x1] }
 0x1d9   :  { %v1027_v56 = vpop.f32.mrf.mxu1 }
 0x1da   :  { %v1028_v58 = vadd.f32 %v1027_v56, %v1026_v54  ;;  %1090 = vmatprep.mubr.bf16.mxu0 %v568_v55  ;;  %v560_v60 = vmax.f32 %v540_v57, 0.0 }
 0x1dc   :  { %v543_v59 = vadd.f32 %v1028_v58, %v1415_v35 }
 0x1de   :  { %v561_v61 = vmax.f32 %v543_v59, 0.0 }
 0x1e0   :  { %v569_v62 = vpack.c.bf16 %v561_v61, %v560_v60 }
 0x1e2   :  { %1091 = vmatmul.mubr.bf16.gmra.mxu0 %v569_v62 }
 0x230   :  { %v759_v53 = vpop.permute.xlu0 %758 }
 0x231   :  { %v764_v54 = vrot.slane %v759_v53, %v60_v36 }
 0x272   :  { %v1435_v1 = vpop.f32.mrf.mxu0 }
 0x273   :  { %v684_v45 = vadd.f32 %v1435_v1, %v939_v14 }
 0x274   :  { %v1437_v2 = vpop.f32.mrf.mxu0 }
 0x275   :  { %v740_v47 = vmax.f32 %v684_v45, 0.0  ;;  %v676_v49 = vadd.f32 %v939_v14, %v1437_v2 }
 0x276   :  { %v1081_v3 = vpop.f32.mrf.mxu0 }
 0x277   :  { %v687_v43 = vadd.f32 %v1081_v3, %v939_v14  ;;  %v738_v51 = vmax.f32 %v676_v49, 0.0 }
 0x278   :  { %v1439_v4 = vpop.f32.mrf.mxu0 }
 0x279   :  { %v741_v46 = vmax.f32 %v687_v43, 0.0  ;;  %v679_v48 = vadd.f32 %v939_v14, %v1439_v4 }
 0x27b   :  { %v739_v50 = vmax.f32 %v679_v48, 0.0 }
 0x282   :  { %v1084_v35 = vpop.f32.mrf.mxu0 }
 0x283   :  { %v700_v32 = vadd.f32 %v1084_v35, %v939_v14 }
 0x284   :  { %v691_v5 = vpop.f32.mrf.mxu0 }
 0x285   :  { %v744_v37 = vmax.f32 %v700_v32, 0.0  ;;  %v692_v41 = vadd.f32 %v939_v14, %v691_v5 }
 0x286   :  { %v1085_v6 = vpop.f32.mrf.mxu0 }
 0x287   :  { %v703_v30 = vadd.f32 %v1085_v6, %v939_v14  ;;  %v742_v44 = vmax.f32 %v692_v41, 0.0 }
 0x288   :  { %v694_v7 = vpop.f32.mrf.mxu0 }
 0x289   :  { %v745_v33 = vmax.f32 %v703_v30, 0.0  ;;  %v695_v38 = vadd.f32 %v939_v14, %v694_v7 }
 0x28b   :  { %v743_v42 = vmax.f32 %v695_v38, 0.0 }
 0x292   :  { %v1088_v8 = vpop.f32.mrf.mxu0 }
 0x293   :  { %v716_v26 = vadd.f32 %v1088_v8, %v939_v14 }
 0x294   :  { %v707_v9 = vpop.f32.mrf.mxu0 }
 0x295   :  { %v748_v28 = vmax.f32 %v716_v26, 0.0  ;;  %v708_v39 = vadd.f32 %v939_v14, %v707_v9 }
 0x296   :  { %v1089_v10 = vpop.f32.mrf.mxu0 }
 0x297   :  { %v719_v24 = vadd.f32 %v1089_v10, %v939_v14  ;;  %v746_v31 = vmax.f32 %v708_v39, 0.0 }
 0x298   :  { %v710_v11 = vpop.f32.mrf.mxu0 }
 0x299   :  { %v749_v27 = vmax.f32 %v719_v24, 0.0  ;;  %v711_v40 = vadd.f32 %v939_v14, %v710_v11 }
 0x29b   :  { %v747_v29 = vmax.f32 %v711_v40, 0.0 }
 0x2a2   :  { %v1092_v12 = vpop.f32.mrf.mxu0 }
 0x2a3   :  { %v732_v17 = vadd.f32 %v1092_v12, %v939_v14 }
 0x2a4   :  { %v723_v13 = vpop.f32.mrf.mxu0 }
 0x2a5   :  { %v752_v20 = vmax.f32 %v732_v17, 0.0  ;;  %v724_v22 = vadd.f32 %v939_v14, %v723_v13 }
 0x2a6   :  { %v1093_v15 = vpop.f32.mrf.mxu0 }
 0x2a7   :  { %v735_v16 = vadd.f32 %v1093_v15, %v939_v14  ;;  %v750_v25 = vmax.f32 %v724_v22, 0.0 }
 0x2a8   :  { %v726_v19 = vpop.f32.mrf.mxu0 }
 0x2a9   :  { %v753_v18 = vmax.f32 %v735_v16, 0.0  ;;  %v727_v21 = vadd.f32 %v939_v14, %v726_v19 }
 0x2ab   :  { %1095 = vmatpush3.xpose.msk.msra.mxu1 %vm765_vm2, %v753_v18  ;;  %v751_v23 = vmax.f32 %v727_v21, 0.0 }
 0x2ac   :  { %1096 = vmatprep.subr.mxu1 %v1195_v63 }
 0x2af   :  { %1097 = vmatpush3.xpose.msk.msra.mxu1 %vm765_vm2, %v752_v20 }
 0x2b0   :  { %1098 = vmatprep.subr.mxu1 %v1195_v63 }
 0x2b3   :  { %1099 = vmatpush3.xpose.msk.msra.mxu1 %vm765_vm2, %v751_v23 }
 0x2b4   :  { %1100 = vmatprep.subr.mxu1 %v1195_v63 }
 0x2b7   :  { %1101 = vmatpush3.xpose.msk.msra.mxu1 %vm765_vm2, %v750_v25 }
 0x2b8   :  { %1102 = vmatprep.subr.mxu1 %v1195_v63 }
 0x2bb   :  { %1103 = vmatpush3.xpose.msk.msra.mxu1 %vm765_vm2, %v749_v27 }
 0x2bc   :  { %1104 = vmatprep.subr.mxu1 %v1195_v63 }
 0x2bf   :  { %1105 = vmatpush3.xpose.msk.msra.mxu1 %vm765_vm2, %v748_v28 }
 0x2c0   :  { %1106 = vmatprep.subr.mxu1 %v1195_v63 }
 0x2c3   :  { %1107 = vmatpush3.xpose.msk.msra.mxu1 %vm765_vm2, %v747_v29 }
 0x2c4   :  { %1108 = vmatprep.subr.mxu1 %v1195_v63 }
 0x2c7   :  { %1109 = vmatpush3.xpose.msk.msra.mxu1 %vm765_vm2, %v746_v31 }
 0x2c8   :  { %1110 = vmatprep.subr.mxu1 %v1195_v63 }
 0x2cb   :  { %1111 = vmatpush3.xpose.msk.msra.mxu1 %vm765_vm2, %v745_v33 }
 0x2cc   :  { %1112 = vmatprep.subr.mxu1 %v1195_v63 }
 0x2cf   :  { %1113 = vmatpush3.xpose.msk.msra.mxu1 %vm765_vm2, %v744_v37 }
 0x2d0   :  { %1114 = vmatprep.subr.mxu1 %v1195_v63 }
 0x2d3   :  { %1115 = vmatpush3.xpose.msk.msra.mxu1 %vm765_vm2, %v743_v42 }
 0x2d4   :  { %1116 = vmatprep.subr.mxu1 %v1195_v63 }
 0x2d7   :  { %1117 = vmatpush3.xpose.msk.msra.mxu1 %vm765_vm2, %v742_v44 }
 0x2d8   :  { %1118 = vmatprep.subr.mxu1 %v1195_v63 }
 0x2db   :  { %1119 = vmatpush3.xpose.msk.msra.mxu1 %vm765_vm2, %v741_v46 }
 0x2dc   :  { %1120 = vmatprep.subr.mxu1 %v1195_v63 }
 0x2df   :  { %1121 = vmatpush3.xpose.msk.msra.mxu1 %vm765_vm2, %v740_v47 }
 0x2e0   :  { %1122 = vmatprep.subr.mxu1 %v1195_v63 }
 0x2e3   :  { %1123 = vmatpush3.xpose.msk.msra.mxu1 %vm765_vm2, %v739_v50 }
 0x2e4   :  { %1124 = vmatprep.subr.mxu1 %v1195_v63 }
 0x2e7   :  { %1125 = vmatpush3.xpose.msk.msra.mxu1 %vm765_vm2, %v738_v51 }
 0x2ea   :  { %1127 = vmatmul.mubr.msk.f32.vlgmr.msra.gmra.mxu1 %vm765_vm2, %v754_v52 }
 0x3aa   :  { %v883_v55 = vpop.f32.mrf.mxu1 }
 0x3ab   :  { %v884_v56 = vadd.f32 %v883_v55, %v764_v54 }
 0x3ac   :  { %v1128_v57 = vpop.f32.mrf.mxu1 }
 0x3ad   :  { %887 = vst [vmem:[#allocation3] sm:$0x1] %v884_v56 }
 0x3ae   :  { %1183 = shalt.err (!%p1180_p4)
}
 0x3af   :  { %897 = dma.vmem_to_hbm [thread:$0]  %s895_s0, 16, %s1496_s9, [#allocation4]  }
 0x3b0   :  { %1192 = dma.done.wait [#allocation4], 16  }
 0x3b1   :  { %1193 = vsyncadd [#allocation4], 4294967280 }
 0x3b2   :  { %901 = vsyncpa [#allocation4], 1 }

</bundles_post_ra>
